<compile_context>
chip_gen: v6e
topology: v6e:2x2x1
jax: 0.10.0
libtpu: 0.0.40
codegen_flags: <defaults>
</compile_context>

<pallas_src>
import jax
import jax.numpy as jnp
from jax import lax
from jax.experimental import pallas as pl
from jax.experimental.pallas import tpu as pltpu

KH = KW = 3
STRIDE = 1   # TODO(synk): only stride=1, groups=1, padding=1, 3x3 is implemented.
PAD = 1
BN_EPS = 1e-5

VMEM_LIMIT_BYTES = 32 * 1024 * 1024    # scoped-VMEM limit; >= 2x the tile budget below
TILE_VMEM_BUDGET = 14 * 1024 * 1024    # per-step footprint budget used to size tiles


def _pick_cout_tile(cout):
    """Full Cout unless it is large and 128/256-divisible."""
    if cout <= 256 or cout % 128 != 0:
        return cout
    return 256 if cout % 256 == 0 else 128


def _pick_row_tile(n, h, w, c3, cout, ct, xb):
    """Largest row tile TR (TR | H) giving a lane-dense TS=TR*W within the VMEM budget."""
    best = None
    for tr in range(1, h + 1):
        if h % tr:
            continue
        ts = tr * w
        if ts % 128 or ts % xb:
            continue
        fp = (2 * c3 * ts * 2            # xa block, double buffered, bf16
              + 2 * c3 * xb * 2          # xb halo block, double buffered, bf16
              + 2 * ct * ts * 4          # conv output tile, double buffered, f32
              + 2 * 3 * cout * c3 * 2    # resident weights (2 buffers assumed), bf16
              + c3 * (ts + xb) * 2       # halo scratch, bf16
              + ct * ts * 4)             # f32 accumulator
        if fp > TILE_VMEM_BUDGET:
            continue
        multi = (n * (h // tr)) >= 2     # keep >=2 parallel steps for v7x's 2 TCs
        key = (multi, ts)
        if best is None or key > best[0]:
            best = (key, tr)
    return None if best is None else best[1]


def _pick_sp_tile2(hw, cout):
    """Spatial tile for the BN+ReLU pass: big, lane-dense, divides H*W."""
    if hw % 128 != 0:
        return hw
    best = 128
    t = 128
    while t <= hw:
        if hw % t == 0 and 4 * cout * t * 4 <= TILE_VMEM_BUDGET:
            best = t
        t += 128
    return best


@jax.jit
def block_conv_forward(x_nchw, w_oihw, bias, x_shortcut=None):
    """BlockConv.forward, post_act path: relu(batchnorm(conv3x3(x))).

    x_nchw: (N, Cin, H, W) f32; w_oihw: (Cout, Cin, 3, 3) f32; bias: (Cout,) f32.
    Returns (N, Cout, H, W) f32.
    """
    # TODO(synk): x_shortcut (residual add between BN and ReLU) not implemented.
    assert x_shortcut is None
    # Conv bias cancels exactly under batch-statistics BN with fixed affine
    # (gamma=1, beta=0); this folding is only valid for that configuration.
    del bias

    N, Cin, H, W = x_nchw.shape
    Cout = w_oihw.shape[0]
    HW = H * W
    C3 = 3 * Cin

    CT = _pick_cout_tile(Cout)
    n_ct = Cout // CT

    # Halo block length along the flattened (row*W) lane dim: must hold 2 extra rows.
    XB = ((2 * W + 127) // 128) * 128
    TR = _pick_row_tile(N, H, W, C3, Cout, CT, XB)
    if TR is None:
        # TODO(synk): pad H*W up to a lane-dense tiling instead of failing.
        raise NotImplementedError(
            f"no row tile for H={H}, W={W}: need TR | H with TR*W % {max(128, XB)} == 0")
    TS = TR * W
    n_rb = H // TR

    # ---- wrapper glue (one fused XLA pass): pad + 3 width-shifted bf16 copies -------
    pad_bot = max(1, -(-XB // W) - 1)     # enough bottom rows so halo blocks stay in bounds
    Hp = H + 1 + pad_bot
    xp = jnp.pad(x_nchw.astype(jnp.bfloat16),
                 ((0, 0), (0, 0), (PAD, pad_bot), (PAD, PAD)))       # (N, Cin, Hp, W+2)
    x3 = jnp.stack([xp[:, :, :, kw:kw + W] for kw in range(KW)], axis=1)
    x3 = x3.reshape(N, C3, Hp * W)        # channel index = kw*Cin + cin, lanes = row*W+col

    # weights -> (kh, Cout, kw*Cin + cin), bf16, kept resident in VMEM
    w3 = jnp.transpose(w_oihw, (2, 0, 3, 1)).reshape(KH, Cout, C3).astype(jnp.bfloat16)

    cparams = pltpu.CompilerParams(
        dimension_semantics=("parallel", "parallel", "arbitrary"),
        vmem_limit_bytes=VMEM_LIMIT_BYTES,
    )

    # ---- pass 1: conv (3 accumulating big-K matmuls) + per-tile BN statistics -------
    def conv_stats_kernel(xa_ref, xb_ref, w_ref, h_ref, sum_ref, m2_ref, halo_ref):
        c = pl.program_id(2)
        co = pl.multiple_of(c * CT, CT)
        # assemble halo: TS "body" lanes + XB lanes holding the next 2 (padded) rows
        halo_ref[:, 0:TS] = xa_ref[0]
        halo_ref[:, TS:TS + XB] = xb_ref[0]
        acc = jnp.zeros((CT, TS), jnp.float32)
        for kh in range(KH):                        # 3 row taps -> lane-shifted windows
            lhs = w_ref[kh, pl.ds(co, CT), :]       # (CT, 3*Cin) bf16, resident weights
            rhs = halo_ref[:, kh * W:kh * W + TS]   # (3*Cin, TS) bf16
            acc = acc + jnp.dot(lhs, rhs, preferred_element_type=jnp.float32)
        h_ref[0] = acc.astype(h_ref.dtype)
        # per-tile BN stats: sum and centered M2 (Chan-combined in the wrapper)
        s = jnp.sum(acc, axis=1, keepdims=True)                      # (CT, 1)
        d = acc - s * (1.0 / TS)
        m2 = jnp.sum(d * d, axis=1, keepdims=True)                   # (CT, 1)
        sum_ref[0, 0] = jnp.transpose(s)            # lane-dense (1, CT) stores
        m2_ref[0, 0] = jnp.transpose(m2)

    h, tile_sum, tile_m2 = pl.pallas_call(
        conv_stats_kernel,
        out_shape=(
            jax.ShapeDtypeStruct((N, Cout, HW), jnp.float32),
            jax.ShapeDtypeStruct((N, n_rb, 1, Cout), jnp.float32),
            jax.ShapeDtypeStruct((N, n_rb, 1, Cout), jnp.float32),
        ),
        grid=(N, n_rb, n_ct),
        in_specs=[
            pl.BlockSpec((1, C3, TS), lambda n, r, c: (n, 0, r)),
            pl.BlockSpec((1, C3, XB), lambda n, r, c: (n, 0, (r + 1) * (TS // XB))),
            pl.BlockSpec((KH, Cout, C3), lambda n, r, c: (0, 0, 0)),   # resident weights
        ],
        out_specs=(
            pl.BlockSpec((1, CT, TS), lambda n, r, c: (n, c, r)),
            pl.BlockSpec((1, 1, 1, CT), lambda n, r, c: (n, r, 0, c)),
            pl.BlockSpec((1, 1, 1, CT), lambda n, r, c: (n, r, 0, c)),
        ),
        scratch_shapes=[pltpu.VMEM((C3, TS + XB), jnp.bfloat16)],
        compiler_params=cparams,
    )(x3, x3, w3)

    # ---- BatchNorm2d(track_running_stats=False): batch stats over (N, H, W) ---------
    # Chan's parallel-variance combine of per-tile (sum, centered M2); every tile has
    # exactly TS elements because TR divides H.
    count = float(N * HW)
    sums = tile_sum[:, :, 0, :]                      # (N, n_rb, Cout)
    m2s = tile_m2[:, :, 0, :]
    mean = jnp.sum(sums, axis=(0, 1)) / count        # (Cout,)
    tile_mean = sums / float(TS)
    m2_total = jnp.sum(m2s + float(TS) * (tile_mean - mean) ** 2, axis=(0, 1))
    var = m2_total / count                           # biased, as BN normalization uses
    inv = lax.rsqrt(var + BN_EPS)
    scale = inv.reshape(Cout, 1)                     # fixed affine: gamma=1, beta=0
    shift = (-mean * inv).reshape(Cout, 1)

    # ---- pass 2: relu(h * scale + shift), lane-dense, output aliased onto h ---------
    TS2 = _pick_sp_tile2(HW, Cout)
    n_sp2 = HW // TS2

    def bn_relu_kernel(h_ref, scale_ref, shift_ref, o_ref):
        y = h_ref[0] * scale_ref[...] + shift_ref[...]
        o_ref[0] = jnp.maximum(y, 0.0).astype(o_ref.dtype)

    out = pl.pallas_call(
        bn_relu_kernel,
        out_shape=jax.ShapeDtypeStruct((N, Cout, HW), jnp.float32),
        grid=(N, n_sp2),
        in_specs=[
            pl.BlockSpec((1, Cout, TS2), lambda n, s: (n, 0, s)),
            pl.BlockSpec((Cout, 1), lambda n, s: (0, 0)),     # resident
            pl.BlockSpec((Cout, 1), lambda n, s: (0, 0)),     # resident
        ],
        out_specs=pl.BlockSpec((1, Cout, TS2), lambda n, s: (n, 0, s)),
        input_output_aliases={0: 0},
        compiler_params=pltpu.CompilerParams(
            dimension_semantics=("parallel", "parallel"),
            vmem_limit_bytes=VMEM_LIMIT_BYTES,
        ),
    )(h, scale, shift)

    return out.reshape(N, Cout, H, W)


def reference_forward(x, w, b):
    """Pure-JAX f32 reference (NCHW), matching the PyTorch module semantics."""
    h = lax.conv_general_dilated(
        x, w, window_strides=(STRIDE, STRIDE),
        padding=((PAD, PAD), (PAD, PAD)),
        dimension_numbers=("NCHW", "OIHW", "NCHW"),
    )
    h = h + b.reshape(1, -1, 1, 1)
    mean = jnp.mean(h, axis=(0, 2, 3), keepdims=True)
    var = jnp.var(h, axis=(0, 2, 3), keepdims=True)
    h = (h - mean) / jnp.sqrt(var + BN_EPS)
    return jnp.maximum(h, 0.0)


if __name__ == "__main__":
    key = jax.random.PRNGKey(0)
    k_x, k_w, k_b = jax.random.split(key, 3)

    N, C_IN, C_OUT, H, W = 2, 4, 8, 16, 16
    x = jax.random.normal(k_x, (N, C_IN, H, W), dtype=jnp.float32)
    w = 0.1 * jax.random.normal(k_w, (C_OUT, C_IN, KH, KW), dtype=jnp.float32)
    b = 0.1 * jax.random.normal(k_b, (C_OUT,), dtype=jnp.float32)

    out = jax.block_until_ready(block_conv_forward(x, w, b))
    ref = jax.block_until_ready(reference_forward(x, w, b))

    assert out.shape == (N, C_OUT, H, W)
    err = float(jnp.max(jnp.abs(out - ref)))
    # bf16 matmul operands (f32 accumulation) -> bf16-appropriate tolerance vs f32 ref.
    assert jnp.allclose(out, ref, atol=3e-2, rtol=3e-2), f"max abs err = {err}"
    print("KERNEL_OK")
</pallas_src>

<mosaic_0001>
module attributes {stable_mosaic.version = 11 : i64} {
  func.func @conv_stats_kernel(%arg0: i32, %arg1: i32, %arg2: i32, %arg3: memref<1x12x256xbf16, #tpu.memory_space<vmem>>, %arg4: memref<1x12x128xbf16, #tpu.memory_space<vmem>>, %arg5: memref<3x8x12xbf16, #tpu.memory_space<vmem>>, %arg6: memref<1x8x256xf32, #tpu.memory_space<vmem>>, %arg7: memref<1x1x1x8xf32, #tpu.memory_space<vmem>>, %arg8: memref<1x1x1x8xf32, #tpu.memory_space<vmem>>, %arg9: memref<12x384xbf16, #tpu.memory_space<vmem>>) attributes {dimension_semantics = [#tpu.dimension_semantics<parallel>, #tpu.dimension_semantics<parallel>, #tpu.dimension_semantics<arbitrary>], iteration_bounds = array<i64: 2, 1, 1>, scalar_prefetch = 0 : i64, scratch_operands = 1 : i64, tpu.core_type = #tpu.core_type<tc>, window_params = [{transform_indices = @transform_0, window_bounds = array<i64: 1, 12, 256>}, {transform_indices = @transform_1, window_bounds = array<i64: 1, 12, 128>}, {pipeline_mode = #tpu.pipeline_mode<synchronous>, transform_indices = @transform_2, window_bounds = array<i64: 3, 8, 12>}, {transform_indices = @transform_3, window_bounds = array<i64: 1, 8, 256>}, {transform_indices = @transform_4, window_bounds = array<i64: 1, 1, 1, 8>}, {transform_indices = @transform_5, window_bounds = array<i64: 1, 1, 1, 8>}]} {
    %c8_i32 = arith.constant 8 : i32
    %0 = arith.muli %arg2, %c8_i32 : i32
    %1 = tpu.assume_multiple %0, 8 : i32
    %c0 = arith.constant 0 : index
    %c0_0 = arith.constant 0 : index
    %c0_1 = arith.constant 0 : index
    %2 = vector.load %arg3[%c0, %c0_0, %c0_1] : memref<1x12x256xbf16, #tpu.memory_space<vmem>>, vector<1x12x256xbf16>
    %3 = vector.shape_cast %2 : vector<1x12x256xbf16> to vector<12x256xbf16>
    %c0_2 = arith.constant 0 : index
    %c0_3 = arith.constant 0 : index
    %4 = vector.load %arg9[%c0_2, %c0_3] : memref<12x384xbf16, #tpu.memory_space<vmem>>, vector<12x256xbf16>
    tpu.vector_store %arg9[%c0_2, %c0_3], %3 {strides = array<i32>} : memref<12x384xbf16, #tpu.memory_space<vmem>>, vector<12x256xbf16>,
    %c0_4 = arith.constant 0 : index
    %c0_5 = arith.constant 0 : index
    %c0_6 = arith.constant 0 : index
    %5 = vector.load %arg4[%c0_4, %c0_5, %c0_6] : memref<1x12x128xbf16, #tpu.memory_space<vmem>>, vector<1x12x128xbf16>
    %6 = vector.shape_cast %5 : vector<1x12x128xbf16> to vector<12x128xbf16>
    %c0_7 = arith.constant 0 : index
    %c256 = arith.constant 256 : index
    %7 = vector.load %arg9[%c0_7, %c256] : memref<12x384xbf16, #tpu.memory_space<vmem>>, vector<12x128xbf16>
    tpu.vector_store %arg9[%c0_7, %c256], %6 {strides = array<i32>} : memref<12x384xbf16, #tpu.memory_space<vmem>>, vector<12x128xbf16>,
    %cst = arith.constant 0.000000e+00 : f32
    %8 = vector.broadcast %cst : f32 to vector<8x256xf32>
    %c0_8 = arith.constant 0 : index
    %9 = arith.index_cast %1 : i32 to index
    %c0_9 = arith.constant 0 : index
    %10 = vector.load %arg5[%c0_8, %9, %c0_9] : memref<3x8x12xbf16, #tpu.memory_space<vmem>>, vector<1x8x12xbf16>
    %11 = vector.shape_cast %10 : vector<1x8x12xbf16> to vector<8x12xbf16>
    %c0_10 = arith.constant 0 : index
    %c0_11 = arith.constant 0 : index
    %12 = vector.load %arg9[%c0_10, %c0_11] : memref<12x384xbf16, #tpu.memory_space<vmem>>, vector<12x256xbf16>
    %cst_12 = arith.constant dense<0.000000e+00> : vector<8x256xf32>
    %13 = tpu.matmul %11, %12, %cst_12 {dimension_numbers = #tpu.dot_dimension_numbers<[1], [0], [0], [1], [0, 0, 1, 1], [], []>} : vector<8x12xbf16>, vector<12x256xbf16>, vector<8x256xf32> -> vector<8x256xf32>
    %14 = arith.addf %8, %13 : vector<8x256xf32>
    %c1 = arith.constant 1 : index
    %15 = arith.index_cast %1 : i32 to index
    %c0_13 = arith.constant 0 : index
    %16 = vector.load %arg5[%c1, %15, %c0_13] : memref<3x8x12xbf16, #tpu.memory_space<vmem>>, vector<1x8x12xbf16>
    %17 = vector.shape_cast %16 : vector<1x8x12xbf16> to vector<8x12xbf16>
    %c0_14 = arith.constant 0 : index
    %c16 = arith.constant 16 : index
    %18 = vector.load %arg9[%c0_14, %c16] : memref<12x384xbf16, #tpu.memory_space<vmem>>, vector<12x256xbf16>
    %cst_15 = arith.constant dense<0.000000e+00> : vector<8x256xf32>
    %19 = tpu.matmul %17, %18, %cst_15 {dimension_numbers = #tpu.dot_dimension_numbers<[1], [0], [0], [1], [0, 0, 1, 1], [], []>} : vector<8x12xbf16>, vector<12x256xbf16>, vector<8x256xf32> -> vector<8x256xf32>
    %20 = arith.addf %14, %19 : vector<8x256xf32>
    %c2 = arith.constant 2 : index
    %21 = arith.index_cast %1 : i32 to index
    %c0_16 = arith.constant 0 : index
    %22 = vector.load %arg5[%c2, %21, %c0_16] : memref<3x8x12xbf16, #tpu.memory_space<vmem>>, vector<1x8x12xbf16>
    %23 = vector.shape_cast %22 : vector<1x8x12xbf16> to vector<8x12xbf16>
    %c0_17 = arith.constant 0 : index
    %c32 = arith.constant 32 : index
    %24 = vector.load %arg9[%c0_17, %c32] : memref<12x384xbf16, #tpu.memory_space<vmem>>, vector<12x256xbf16>
    %cst_18 = arith.constant dense<0.000000e+00> : vector<8x256xf32>
    %25 = tpu.matmul %23, %24, %cst_18 {dimension_numbers = #tpu.dot_dimension_numbers<[1], [0], [0], [1], [0, 0, 1, 1], [], []>} : vector<8x12xbf16>, vector<12x256xbf16>, vector<8x256xf32> -> vector<8x256xf32>
    %26 = arith.addf %20, %25 : vector<8x256xf32>
    %c0_19 = arith.constant 0 : index
    %c0_20 = arith.constant 0 : index
    %c0_21 = arith.constant 0 : index
    %27 = vector.load %arg6[%c0_19, %c0_20, %c0_21] : memref<1x8x256xf32, #tpu.memory_space<vmem>>, vector<1x8x256xf32>
    %28 = vector.shape_cast %27 : vector<1x8x256xf32> to vector<8x256xf32>
    %29 = vector.shape_cast %26 : vector<8x256xf32> to vector<1x8x256xf32>
    tpu.vector_store %arg6[%c0_19, %c0_20, %c0_21], %29 {strides = array<i32>} : memref<1x8x256xf32, #tpu.memory_space<vmem>>, vector<1x8x256xf32>,
    %cst_22 = arith.constant dense<0.000000e+00> : vector<8xf32>
    %30 = vector.multi_reduction <add>, %26, %cst_22 [1] : vector<8x256xf32> to vector<8xf32>
    %31 = vector.shape_cast %30 : vector<8xf32> to vector<8x1xf32>
    %cst_23 = arith.constant 3.906250e-03 : f32
    %32 = vector.broadcast %cst_23 : f32 to vector<8x1xf32>
    %33 = arith.mulf %31, %32 : vector<8x1xf32>
    %34 = vector.broadcast %33 : vector<8x1xf32> to vector<8x256xf32>
    %35 = arith.subf %26, %34 : vector<8x256xf32>
    %36 = arith.mulf %35, %35 : vector<8x256xf32>
    %cst_24 = arith.constant dense<0.000000e+00> : vector<8xf32>
    %37 = vector.multi_reduction <add>, %36, %cst_24 [1] : vector<8x256xf32> to vector<8xf32>
    %38 = vector.shape_cast %37 : vector<8xf32> to vector<8x1xf32>
    %39 = tpu.transpose %31, [1, 0] : vector<8x1xf32> -> vector<1x8xf32>
    %c0_25 = arith.constant 0 : index
    %c0_26 = arith.constant 0 : index
    %c0_27 = arith.constant 0 : index
    %c0_28 = arith.constant 0 : index
    %40 = vector.load %arg7[%c0_25, %c0_26, %c0_27, %c0_28] : memref<1x1x1x8xf32, #tpu.memory_space<vmem>>, vector<1x1x1x8xf32>
    %41 = vector.shape_cast %40 : vector<1x1x1x8xf32> to vector<1x8xf32>
    %42 = vector.shape_cast %39 : vector<1x8xf32> to vector<1x1x1x8xf32>
    tpu.vector_store %arg7[%c0_25, %c0_26, %c0_27, %c0_28], %42 {strides = array<i32>} : memref<1x1x1x8xf32, #tpu.memory_space<vmem>>, vector<1x1x1x8xf32>,
    %43 = tpu.transpose %38, [1, 0] : vector<8x1xf32> -> vector<1x8xf32>
    %c0_29 = arith.constant 0 : index
    %c0_30 = arith.constant 0 : index
    %c0_31 = arith.constant 0 : index
    %c0_32 = arith.constant 0 : index
    %44 = vector.load %arg8[%c0_29, %c0_30, %c0_31, %c0_32] : memref<1x1x1x8xf32, #tpu.memory_space<vmem>>, vector<1x1x1x8xf32>
    %45 = vector.shape_cast %44 : vector<1x1x1x8xf32> to vector<1x8xf32>
    %46 = vector.shape_cast %43 : vector<1x8xf32> to vector<1x1x1x8xf32>
    tpu.vector_store %arg8[%c0_29, %c0_30, %c0_31, %c0_32], %46 {strides = array<i32>} : memref<1x1x1x8xf32, #tpu.memory_space<vmem>>, vector<1x1x1x8xf32>,
    return
  }
  func.func @transform_0(%arg0: i32, %arg1: i32, %arg2: i32) -> (i32, i32, i32) {
    %c0_i32 = arith.constant 0 : i32
    %c0_i32_0 = arith.constant 0 : i32
    return %arg0, %c0_i32, %arg1 : i32, i32, i32
  }
  func.func @transform_1(%arg0: i32, %arg1: i32, %arg2: i32) -> (i32, i32, i32) {
    %c1_i32 = arith.constant 1 : i32
    %0 = arith.addi %arg1, %c1_i32 : i32
    %c2_i32 = arith.constant 2 : i32
    %1 = arith.muli %0, %c2_i32 : i32
    %c0_i32 = arith.constant 0 : i32
    %c0_i32_0 = arith.constant 0 : i32
    return %arg0, %c0_i32, %1 : i32, i32, i32
  }
  func.func @transform_2(%arg0: i32, %arg1: i32, %arg2: i32) -> (i32, i32, i32) {
    %c0_i32 = arith.constant 0 : i32
    %c0_i32_0 = arith.constant 0 : i32
    %c0_i32_1 = arith.constant 0 : i32
    %c0_i32_2 = arith.constant 0 : i32
    return %c0_i32, %c0_i32_0, %c0_i32_1 : i32, i32, i32
  }
  func.func @transform_3(%arg0: i32, %arg1: i32, %arg2: i32) -> (i32, i32, i32) {
    %c0_i32 = arith.constant 0 : i32
    return %arg0, %arg2, %arg1 : i32, i32, i32
  }
  func.func @transform_4(%arg0: i32, %arg1: i32, %arg2: i32) -> (i32, i32, i32, i32) {
    %c0_i32 = arith.constant 0 : i32
    %c0_i32_0 = arith.constant 0 : i32
    return %arg0, %arg1, %c0_i32, %arg2 : i32, i32, i32, i32
  }
  func.func @transform_5(%arg0: i32, %arg1: i32, %arg2: i32) -> (i32, i32, i32, i32) {
    %c0_i32 = arith.constant 0 : i32
    %c0_i32_0 = arith.constant 0 : i32
    return %arg0, %arg1, %c0_i32, %arg2 : i32, i32, i32, i32
  }
}

module attributes {stable_mosaic.version = 11 : i64} {
  func.func @bn_relu_kernel(%arg0: i32, %arg1: i32, %arg2: memref<1x8x256xf32, #tpu.memory_space<vmem>>, %arg3: memref<8x1xf32, #tpu.memory_space<vmem>>, %arg4: memref<8x1xf32, #tpu.memory_space<vmem>>, %arg5: memref<1x8x256xf32, #tpu.memory_space<vmem>>) attributes {dimension_semantics = [#tpu.dimension_semantics<parallel>, #tpu.dimension_semantics<parallel>], iteration_bounds = array<i64: 2, 1>, scalar_prefetch = 0 : i64, scratch_operands = 0 : i64, tpu.core_type = #tpu.core_type<tc>, window_params = [{transform_indices = @transform_0, window_bounds = array<i64: 1, 8, 256>}, {pipeline_mode = #tpu.pipeline_mode<synchronous>, transform_indices = @transform_1, window_bounds = array<i64: 8, 1>}, {pipeline_mode = #tpu.pipeline_mode<synchronous>, transform_indices = @transform_2, window_bounds = array<i64: 8, 1>}, {transform_indices = @transform_3, window_bounds = array<i64: 1, 8, 256>}]} {
    %c0 = arith.constant 0 : index
    %c0_0 = arith.constant 0 : index
    %c0_1 = arith.constant 0 : index
    %0 = vector.load %arg2[%c0, %c0_0, %c0_1] : memref<1x8x256xf32, #tpu.memory_space<vmem>>, vector<1x8x256xf32>
    %1 = vector.shape_cast %0 : vector<1x8x256xf32> to vector<8x256xf32>
    %c0_2 = arith.constant 0 : index
    %c0_3 = arith.constant 0 : index
    %2 = vector.load %arg3[%c0_2, %c0_3] : memref<8x1xf32, #tpu.memory_space<vmem>>, vector<8x1xf32>
    %3 = vector.broadcast %2 : vector<8x1xf32> to vector<8x256xf32>
    %4 = arith.mulf %1, %3 : vector<8x256xf32>
    %c0_4 = arith.constant 0 : index
    %c0_5 = arith.constant 0 : index
    %5 = vector.load %arg4[%c0_4, %c0_5] : memref<8x1xf32, #tpu.memory_space<vmem>>, vector<8x1xf32>
    %6 = vector.broadcast %5 : vector<8x1xf32> to vector<8x256xf32>
    %7 = arith.addf %4, %6 : vector<8x256xf32>
    %cst = arith.constant 0.000000e+00 : f32
    %8 = vector.broadcast %cst : f32 to vector<8x256xf32>
    %9 = arith.maximumf %7, %8 : vector<8x256xf32>
    %c0_6 = arith.constant 0 : index
    %c0_7 = arith.constant 0 : index
    %c0_8 = arith.constant 0 : index
    %10 = vector.load %arg5[%c0_6, %c0_7, %c0_8] : memref<1x8x256xf32, #tpu.memory_space<vmem>>, vector<1x8x256xf32>
    %11 = vector.shape_cast %10 : vector<1x8x256xf32> to vector<8x256xf32>
    %12 = vector.shape_cast %9 : vector<8x256xf32> to vector<1x8x256xf32>
    tpu.vector_store %arg5[%c0_6, %c0_7, %c0_8], %12 {strides = array<i32>} : memref<1x8x256xf32, #tpu.memory_space<vmem>>, vector<1x8x256xf32>,
    return
  }
  func.func @transform_0(%arg0: i32, %arg1: i32) -> (i32, i32, i32) {
    %c0_i32 = arith.constant 0 : i32
    %c0_i32_0 = arith.constant 0 : i32
    return %arg0, %c0_i32, %arg1 : i32, i32, i32
  }
  func.func @transform_1(%arg0: i32, %arg1: i32) -> (i32, i32) {
    %c0_i32 = arith.constant 0 : i32
    %c0_i32_0 = arith.constant 0 : i32
    %c0_i32_1 = arith.constant 0 : i32
    return %c0_i32, %c0_i32_0 : i32, i32
  }
  func.func @transform_2(%arg0: i32, %arg1: i32) -> (i32, i32) {
    %c0_i32 = arith.constant 0 : i32
    %c0_i32_0 = arith.constant 0 : i32
    %c0_i32_1 = arith.constant 0 : i32
    return %c0_i32, %c0_i32_0 : i32, i32
  }
  func.func @transform_3(%arg0: i32, %arg1: i32) -> (i32, i32, i32) {
    %c0_i32 = arith.constant 0 : i32
    %c0_i32_0 = arith.constant 0 : i32
    return %arg0, %c0_i32, %arg1 : i32, i32, i32
  }
}

</mosaic_0001>

<bundles_post_ra>
// kernel: mul.16
= control target key start
LH: loop header
LB: loop body
LE: loop exit
PB: predicated region body
PF: predicated region fallthrough
CT: control target
= control target key end

     0   :  { %s34_s0 = inlined_call_operand.vmem [shape: f32[8,1], index: 0, kind: input, shape index: {}]   ;;  %s35_s1 = inlined_call_operand.vmem [shape: f32[8,1], index: 1, kind: input, shape index: {}]   ;;  %s36_s2 = inlined_call_operand.vmem [shape: f32[8,1], index: 2, kind: output, shape index: {}]  }
   0x1   :  { %v3_v0 = vld [vmem:[%s34_s0] sm:$0xff] }
   0x2   :  { %v4_v1 = vld [vmem:[%s35_s1] sm:$0xff] }
   0x3   :  { %v7_v2 = vmul.f32 %v4_v1, %v3_v0 }
   0x5   :  { %9 = vst [vmem:[%s36_s2] sm:$0xff] %v7_v2 }

// kernel: block_conv_forward.3
= control target key start
LH: loop header
LB: loop body
LE: loop exit
PB: predicated region body
PF: predicated region fallthrough
CT: control target
= control target key end

     0   :  { %s403_s12 = smov 0   ;;  %s405_s13 = smov 0   ;;  %s442_s0 = inlined_call_operand.vmem [shape: f32[2,8,256], index: 0, kind: input, shape index: {}, may-alias: {0,3}]   ;;  %s443_s1 = inlined_call_operand.vmem [shape: f32[8,1], index: 1, kind: input, shape index: {}]   ;;  %s444_s2 = inlined_call_operand.vmem [shape: f32[8,1], index: 2, kind: input, shape index: {}]   ;;  %s445_s3 = inlined_call_operand.vmem [shape: f32[2,8,256], index: 3, kind: output, shape index: {}, may-alias: {0,3}]  }
   0x1   :  { %s407_s14 = smov 0  }
   0x2 LB: > { %s25_s15 = sadd.s32 1, %s376_s13  ;;  %p323_p0 = scmp.ge.s32.totalorder %s380_s14, 1  ;;  %s380_s14 = sphi %s407_s14, %s13_s14   ;;  %s376_s13 = sphi %s405_s13, %s447_s13   ;;  %s372_s12 = sphi %s403_s12, %s446_s12  }
   0x3   : > { %p27_p1 = scmp.ge.s32.totalorder %s25_s15, 2  ;;  %p158_p2 = scmp.lt.s32.totalorder %s380_s14, 3 }
   0x5   : > { %s449_s15 = smov (%p27_p1, %s25_s15), 0  ;;  %p159_p3 = pnand %p323_p0, %p158_p2 }
   0x6   : > { %p191_p4 = scmp.lt.s32.totalorder (!%p159_p3), %s372_s12, 1 }
   0x7   : > { %162 = sbr.rel (%p159_p3) target bundleno = 147 (0x93), region = 32 }
   0xc   : > { %v212_v0 = vld [vmem:[%s443_s1] sm:$0xff]  ;;  %v382_v1 = vmov 0   ;;  %s451_s12 = smov (!%p191_p4, %s372_s12), 1 }
   0xd   : > { %357 = vset.pattern.permute.xlu0 %v382_v1  ;;  %v220_v2 = vld [vmem:[%s444_s2] sm:$0xff]  ;;  %s330_s20 = sshll.u32 %s451_s12, 4 }
   0xe   : > { %215 = vperm.xlu0 %357, %v212_v0   ;;  %s198_s23 = scalar_lea.vmem %s442_s0, %s330_s20  ;;  %s208_s26 = scalar_lea.vmem %s445_s3, %s330_s20 }
   0xf   : > { %v210_v4 = vld [vmem:[%s198_s23] sm:$0xff]  ;;  %v211_v5 = vld [vmem:[%s198_s23 + $0x8] sm:$0xff] }
  0x12   : > { %223 = vperm.xlu0 %357, %v220_v2  }
  0x89   : > { %v216_v3 = vpop.permute.xlu0 %215 }
  0x8a   : > { %v218_v6 = vmul.f32 %v216_v3, %v210_v4  ;;  %v219_v7 = vmul.f32 %v216_v3, %v211_v5 }
  0x8d   : > { %v224_v8 = vpop.permute.xlu0 %223 }
  0x8e   : > { %v226_v9 = vadd.f32 %v224_v8, %v218_v6  ;;  %v227_v10 = vadd.f32 %v224_v8, %v219_v7 }
  0x90   : > { %v228_v11 = vmax.f32 %v226_v9, 0.0  ;;  %v229_v12 = vmax.f32 %v227_v10, 0.0 }
  0x92   : > { %230 = vst [vmem:[%s208_s26] sm:$0xff] %v228_v11  ;;  %231 = vst [vmem:[%s208_s26 + $0x8] sm:$0xff] %v229_v12 }
  0x93 PF: > { %s13_s14 = sadd.s32 1, %s380_s14   ;;  %s446_s12 = smov %s376_s13 }
  0x94   : > { %p10_p5 = scmp.ge.s32.totalorder %s13_s14, 4   ;;  %s447_s13 = smov %s449_s15 }
  0x96   :  { %12 = sbr.rel (!%p10_p5) target bundleno = 2 (0x2), region = 62 }

// kernel: block_conv_forward.2
= control target key start
LH: loop header
LB: loop body
LE: loop exit
PB: predicated region body
PF: predicated region fallthrough
CT: control target
= control target key end

     0   :  { %s1634_s18 = smov 0   ;;  %s1636_s19 = smov 0   ;;  %s1742_s0 = inlined_call_operand.vmem [shape: bf16[2,12,384], index: 0, kind: input, shape index: {}, may-alias: {0,1}]   ;;  %s1743_s1 = inlined_call_operand.vmem [shape: bf16[2,12,384], index: 1, kind: input, shape index: {}, may-alias: {0,1}]   ;;  %s1744_s2 = inlined_call_operand.vmem [shape: bf16[3,8,12], index: 2, kind: input, shape index: {}]   ;;  %s1745_s3 = inlined_call_operand.vmem [shape: f32[2,8,256], index: 3, kind: output, shape index: {0}]   ;;  %s1746_s4 = inlined_call_operand.vmem [shape: f32[2,1,1,8], index: 4, kind: output, shape index: {1}]   ;;  %s1747_s5 = inlined_call_operand.vmem [shape: f32[2,1,1,8], index: 5, kind: output, shape index: {2}]  }
   0x1   :  { %s1638_s20 = smov 0   ;;  %s1640_s21 = smov 0  }
   0x2   :  { %s1642_s22 = smov 0  }
   0x3 LB: > { %s35_s23 = sadd.s32 1, %s1591_s21  ;;  %p51_p1 = scmp.ne.s32.totalorder %s1583_s19, %s1579_s18  ;;  %s1595_s22 = sphi %s1642_s22, %s16_s22   ;;  %s1591_s21 = sphi %s1640_s21, %s1752_s21   ;;  %s1587_s20 = sphi %s1638_s20, %s1751_s20   ;;  %s1583_s19 = sphi %s1636_s19, %s1750_s19   ;;  %s1579_s18 = sphi %s1634_s18, %s1749_s18  }
   0x4   : > { %p37_p0 = scmp.ge.s32.totalorder %s35_s23, 2  ;;  %p52_p2 = scmp.eq.s32.totalorder %s1595_s22, 0 }
   0x5   : > { %s44_s26 = sadd.s32 1, %s1583_s19  ;;  %p1427_p5 = scmp.ge.s32.totalorder %s1595_s22, 2 }
   0x6   : > { %s1754_s23 = smov (%p37_p0, %s35_s23), 0  ;;  %p1665_p3 = por %p52_p2, %p51_p1 }
   0x7   : > { %s39_s25 = ssub.s32 %s1591_s21, %s1754_s23  ;;  %223 = sbr.rel (%p1427_p5) target bundleno = 31 (0x1f), region = 20 }
   0x8   : > { %p42_p4 = scmp.eq.s32.totalorder %s39_s25, 0 }
   0xa   : > { %s1673_s27 = scalar_select %p42_p4, %s1583_s19, %s44_s26  }
   0xc   : > { %226 = sbr.rel (!%p1665_p3) target bundleno = 25 (0x19), region = 24  ;;  %s228_s28 = sand.u32 (%p1665_p3), 1, %s1583_s19  }
   0xd   : > { %s1463_s29 = smul.u32 (%p1665_p3), 24, %s1591_s21  ;;  %s1428_s30 = sshll.u32 (%p1665_p3), %s228_s28, 4 }
   0xe   : > { %s230_s9 = scalar_lea.vmem (%p1665_p3), [#allocation3], %s1428_s30   ;;  %s1597_s10 = smov (%p1665_p3), 0  }
   0xf   : > { %s240_s8 = scalar_lea.vmem (%p1665_p3), %s1742_s0, %s1463_s29  }
  0x11 LB: >> { %v439_v0 = vld [vmem:[%s240_s8] sm:$0xff]  ;;  %v441_v1 = vld [vmem:[%s240_s8 + $0xc] sm:$0xff]  ;;  %s433_s10 = sadd.s32 1, %s1599_s10   ;;  %s1599_s10 = sphi %s1597_s10, %s433_s10  }
  0x12   : >> { %440 = vst [vmem:[%s230_s9] sm:$0xff] %v439_v0  ;;  %442 = vst [vmem:[%s230_s9 + $0x8] sm:$0xff] %v441_v1  ;;  %p432_p6 = scmp.ge.s32.totalorder %s433_s10, 1 }
  0x14   : > { %435 = sbr.rel (!%p432_p6) target bundleno = 17 (0x11), region = 238 }
  0x19 PF: > { %654 = sbr.rel (!%p1665_p3) target bundleno = 31 (0x1f), region = 90  ;;  %s656_s11 = sand.u32 (%p1665_p3), 1, %s1583_s19  }
  0x1a   : > { %s1441_s12 = smul.u32 (%p1665_p3), 24, %s1591_s21  ;;  %s1440_s13 = sshll.u32 (%p1665_p3), %s656_s11, 3 }
  0x1b   : > { %s658_s17 = scalar_lea.vmem (%p1665_p3), [#allocation4], %s1440_s13 }
  0x1c   : > { %s1234_s16 = scalar_lea.vmem (%p1665_p3), %s1743_s1, %s1441_s12 }
  0x1d   : > { %v1442_v2 = vld [vmem:[%s1234_s16 + $0x8] sm:$0xf] (%p1665_p3)  ;;  %v1443_v3 = vld [vmem:[%s1234_s16 + $0x14] sm:$0xf] (%p1665_p3) }
  0x1e   : > { %682 = vst [vmem:[%s658_s17] sm:$0xf] %v1442_v2  ;;  %684 = vst [vmem:[%s658_s17 + $0x4] sm:$0xf] %v1443_v3 }
  0x1f PF: > { %p1444_p7 = scmp.ge.s32.totalorder %s1595_s22, 1  ;;  %p711_p8 = scmp.lt.s32.totalorder %s1595_s22, 3 }
  0x21   : > { %p712_p9 = pnand %p1444_p7, %p711_p8 }
  0x22   : > { %s718_s24 = sand.u32 (!%p712_p9), 1, %s1579_s18   ;;  %s1602_s18 = smov (!%p712_p9), 112  }
  0x23   : > { %715 = sbr.rel (%p712_p9) target bundleno = 793 (0x319), region = 131  ;;  %s1446_s25 = sshll.u32 (!%p712_p9), %s718_s24, 3 }
  0x24   : > { %s1445_s26 = sshll.u32 (!%p712_p9), %s718_s24, 4  ;;  %s727_s28 = scalar_lea.vmem (!%p712_p9), [#allocation4], %s1446_s25 }
  0x25   : > { %s720_s29 = scalar_lea.vmem (!%p712_p9), [#allocation3], %s1445_s26  ;;  %s1603_s7 = smov (!%p712_p9), 96  }
  0x26   : > { %p790_p10 = scmp.lt.s32.totalorder (!%p712_p9), %s1587_s20, 1 }
  0x28   : > { %v827_v4 = vld [vmem:[%s727_s28] sm:$0xf]  ;;  %v828_v5 = vld [vmem:[%s727_s28 + $0x4] sm:$0x3]  ;;  %v824_v7 = vld [vmem:[%s720_s29 + $0x8] sm:$0x33] }
  0x29   : > { %v823_v6 = vld [vmem:[%s720_s29] sm:$0xff]  ;;  %829 = vst [vmem:[#allocation2 + $0x8] sm:$0xf] %v827_v4  ;;  %830 = vst [vmem:[#allocation2 + $0x14] sm:$0x3] %v828_v5  ;;  %v1601_v8 = vmov 0  }
  0x2a   : > { %826 = vst [vmem:[#allocation2 + $0xc] sm:$0x33] %v824_v7  ;;  %909 = vmatprep.mubr.bf16.mxu0 %v1601_v8  ;;  %959 = vmatprep.mubr.bf16.mxu1 %v1601_v8  ;;  %vm870_vm0 = vcmask 1045504   ;;  %vm866_vm1 = vcmask 97280   ;;  %v835_v14 = vld [vmem:[%s1744_s2] sm:$0xf] }
  0x2b   : > { %vm863_vm2 = vcmask 916480   ;;  %vm978_vm3 = vcmask 785408   ;;  %v1449_v23 = vld [vmem:[%s1744_s2 + $0x4] sm:$0xf]  ;;  %v1457_v28 = vld [vmem:[%s1744_s2 + $0x8] sm:$0xf] }
  0x2c   : > { %s1756_s20 = smov (!%p790_p10, %s1587_s20), 1  ;;  %vm1078_vm4 = vcmask 57344  }
  0x2d   : > { %s1462_s12 = sshll.u32 %s1756_s20, 4  ;;  %s811_s24 = scalar_lea.vmem %s1746_s4, %s1756_s20 }
  0x2e   : > { %s801_s15 = scalar_lea.vmem %s1745_s3, %s1462_s12  ;;  %s820_s28 = scalar_lea.vmem %s1747_s5, %s1756_s20 }
  0x30   : > { %v1540_v9 = vld [vmem:[#allocation2 + $0x8] ss:$12 sps:$4 sm:$0x3f]  }
  0x31   : > { %v837_v10 = vld [vmem:[#allocation2 + $0xc] sm:$0x33]  ;;  %861 = vrot.lane.b32.xlu1 %v1540_v9, %s1602_s18 }
  0x32   : > { %v1450_v11 = vcombine.low %v823_v6, %v837_v10  ;;  %v1451_v12 = vcombine.high %v823_v6, %v837_v10 }
  0x34   : > { %857 = vrot.lane.b32.xlu0 %v1450_v11, %s1602_s18  ;;  %1455 = vmatprep.subr.msk.bf16.mxu1 %vm870_vm0, %v1451_v12  ;;  %v922_v13 = vsel %vm870_vm0, %v1450_v11, 0 }
  0x35   : > { %942 = vmatpush1.bf16.msra.mxu1 %v922_v13  ;;  %972 = vrot.lane.b32.xlu1 %v1450_v11, %s1603_s7 }
  0x38   : > { %859 = vrot.lane.b32.xlu0 %v1451_v12, %s1602_s18  ;;  %1456 = vmatmul.mubr.msk.bf16.vlgmr.msra.gmra.mxu1 %vm866_vm1, %v835_v14 }
  0x39   : > { %976 = vrot.lane.b32.xlu1 %v1540_v9, %s1603_s7 }
  0x3c   : > { %974 = vrot.lane.b32.xlu0 %v1451_v12, %s1603_s7 }
  0xa3   : > { %v862_v15 = vpop.permute.xlu1 %861 }
  0xa6   : > { %v858_v16 = vpop.permute.xlu0 %857 }
  0xa7   : > { %v973_v17 = vpop.permute.xlu1 %972 }
  0xaa   : > { %v860_v18 = vpop.permute.xlu0 %859 }
  0xab   : > { %v865_v19 = vsel %vm863_vm2, %v860_v18, %v862_v15  ;;  %v864_v20 = vsel %vm863_vm2, %v858_v16, %v860_v18  ;;  %v977_v22 = vpop.permute.xlu1 %976 }
  0xac   : > { %1453 = vmatprep.subr.msk.bf16.mxu0 %vm870_vm0, %v865_v19  ;;  %v872_v21 = vsel %vm870_vm0, %v864_v20, 0 }
  0xad   : > { %892 = vmatpush1.bf16.msra.mxu0 %v872_v21 }
  0xae   : > { %v975_v24 = vpop.permute.xlu0 %974 }
  0xaf   : > { %v979_v25 = vsel %vm978_vm3, %v973_v17, %v975_v24  ;;  %v980_v26 = vsel %vm978_vm3, %v975_v24, %v977_v22 }
  0xb0   : > { %v985_v27 = vsel %vm870_vm0, %v979_v25, 0  ;;  %1454 = vmatmul.mubr.msk.bf16.vlgmr.msra.gmra.mxu0 %vm866_vm1, %v1449_v23  ;;  %1458 = vmatprep.subr.msk.bf16.mxu0 %vm870_vm0, %v980_v26 }
  0xb1   : > { %1005 = vmatpush1.bf16.msra.mxu0 %v985_v27  ;;  %1022 = vmatprep.mubr.bf16.mxu0 %v1601_v8 }
  0xb8   : > { %1459 = vmatmul.mubr.msk.bf16.vlgmr.msra.gmra.mxu0 %vm866_vm1, %v1457_v28 }
  0xf8   : > { %v961_v29 = vpop.f32.mrf.mxu1 }
  0xfa   : > { %v963_v30 = vpop.f32.mrf.mxu1 }
  0xfc   : > { %v965_v31 = vpop.f32.mrf.mxu1 }
  0xfe   : > { %v966_v32 = vpop.f32.mrf.mxu1 }
 0x170   : > { %v911_v33 = vpop.f32.mrf.mxu0 }
 0x171   : > { %v962_v37 = vadd.f32 %v961_v29, %v911_v33 }
 0x172   : > { %v913_v34 = vpop.f32.mrf.mxu0 }
 0x173   : > { %v964_v39 = vadd.f32 %v963_v30, %v913_v34 }
 0x174   : > { %v915_v35 = vpop.f32.mrf.mxu0 }
 0x176   : > { %v916_v36 = vpop.f32.mrf.mxu0 }
 0x178   : > { %v1024_v38 = vpop.f32.mrf.mxu0 }
 0x179   : > { %v1031_v40 = vadd.f32 %v1024_v38, %v962_v37 }
 0x17a   : > { %v1026_v41 = vpop.f32.mrf.mxu0 }
 0x17b   : > { %1033 = vst [vmem:[%s801_s15] sm:$0xff] %v1031_v40  ;;  %v1032_v42 = vadd.f32 %v1026_v41, %v964_v39 }
 0x17c   : > { %v1028_v43 = vpop.f32.mrf.mxu0 }
 0x17d   : > { %1034 = vst [vmem:[%s801_s15 + $0x8] sm:$0xff] %v1032_v42  ;;  %v1035_v44 = vadd.f32 %v1032_v42, %v1031_v40 }
 0x17e   : > { %v1029_v45 = vpop.f32.mrf.mxu0 }
 0x17f   : > { %1036 = vadd.xlane.f32.xlu0 %v1035_v44 }
 0x208   : > { %v1037_v46 = vpop.xlane.xlu0 %1036 }
 0x209   : > { %v1038_v47 = vmul.f32 0.00390625, %v1037_v46  ;;  %1046 = vxpose.xlu0.b32.start.end [1/1] (short) (narrow) %v1037_v46, 8 }
 0x20b   : > { %v1039_v48 = vsub.f32 %v1031_v40, %v1038_v47  ;;  %v1040_v49 = vsub.f32 %v1032_v42, %v1038_v47 }
 0x20d   : > { %v1041_v50 = vmul.f32 %v1039_v48, %v1039_v48  ;;  %v1042_v51 = vmul.f32 %v1040_v49, %v1040_v49 }
 0x20f   : > { %v1043_v52 = vadd.f32 %v1042_v51, %v1041_v50 }
 0x211   : > { %1044 = vadd.xlane.f32.xlu1 %v1043_v52 }
 0x285   : > { %v1062_v53 = vpop.trf.xlu0 }
 0x286   : > { %1079 = vst.msk [vmem:[%s811_s24] sm:$0x1] %vm1078_vm4, %v1062_v53 }
 0x29a   : > { %v1045_v54 = vpop.xlane.xlu1 %1044 }
 0x29b   : > { %1080 = vxpose.xlu1.b32.start.end [1/1] (short) (narrow) %v1045_v54, 8 }
 0x317   : > { %v1096_v55 = vpop.trf.xlu1 }
 0x318   : > { %1112 = vst.msk [vmem:[%s820_s28] sm:$0x1] %vm1078_vm4, %v1096_v55 }
 0x319 PF: > { %s16_s22 = sadd.s32 1, %s1595_s22   ;;  %s1749_s18 = smov %s1583_s19 }
 0x31a   : > { %p13_p11 = scmp.ge.s32.totalorder %s16_s22, 4   ;;  %s1750_s19 = smov %s1673_s27 }
 0x31b   : > { %s1751_s20 = smov %s1591_s21  ;;  %s1752_s21 = smov %s1754_s23 }
 0x31c   :  { %15 = sbr.rel (!%p13_p11) target bundleno = 3 (0x3), region = 271 }

</bundles_post_ra>
